<compile_context>
chip_gen: v7x
topology: tpu7x:2x2x1
jax: 0.10.0
libtpu: 0.0.40
codegen_flags: <defaults>
</compile_context>

<pallas_src>
import functools

import jax
import jax.numpy as jnp
from jax.experimental import pallas as pl
from jax.experimental.pallas import tpu as pltpu

LANE = 128
SUBLANE = 8


def _round_up(n, m):
    return (n + m - 1) // m * m


def _choose_tile(batch, block_m):
    """Pick the batch tile tm and padded batch b_pad (static Python ints)."""
    b_r8 = _round_up(batch, SUBLANE)
    tm = min(block_m, b_r8)
    # Ensure >= 2 grid steps whenever possible: lets the BlockSpec pipeline
    # overlap DMA/compute and shards batch across v7x's two TensorCores.
    if b_r8 // tm < 2 and b_r8 > SUBLANE:
        tm = _round_up(-(-b_r8 // 2), SUBLANE)  # ceil(b_r8 / 2), sublane-aligned
    b_pad = _round_up(b_r8, tm)
    return tm, b_pad


def dqn_kernel(x_ref, w1_ref, b1_ref, w2_ref, b2_ref, o_ref):
    # fc1: bf16 x bf16 -> f32 accumulate on the MXU.
    h = jnp.dot(x_ref[...], w1_ref[...], preferred_element_type=jnp.float32)
    # Bias add + ReLU in f32 on the VPU.
    h = jnp.maximum(h + b1_ref[...], 0.0)
    # fc2: narrow-N matmul (N = action_dim); f32 accumulate.
    out = jnp.dot(h.astype(w2_ref.dtype), w2_ref[...],
                  preferred_element_type=jnp.float32)
    o_ref[...] = (out + b2_ref[...]).astype(o_ref.dtype)


def prepare_dqn_params(w1, b1, w2, b2):
    """One-time parameter prep (do this at init, NOT per forward call).

    Casts weights to bf16 and pads the fc1 contraction dim to a sublane
    multiple. fc2 weights stay at action_dim columns so the kernel's output
    (and its HBM writeback) contains no padded action lanes.
    """
    state_dim, hidden_dim = w1.shape
    action_dim = w2.shape[1]
    k_pad = _round_up(state_dim, SUBLANE)
    w1_p = jnp.zeros((k_pad, hidden_dim), jnp.bfloat16).at[:state_dim, :].set(
        w1.astype(jnp.bfloat16))
    b1_p = b1.reshape(1, hidden_dim).astype(jnp.float32)
    w2_p = w2.astype(jnp.bfloat16)                      # (hidden_dim, action_dim)
    b2_p = b2.reshape(1, action_dim).astype(jnp.float32)
    return w1_p, b1_p, w2_p, b2_p


@functools.partial(jax.jit, static_argnames=("block_m",))
def dqn_forward(x, w1_p, b1_p, w2_p, b2_p, *, block_m=256):
    """Fused DQN forward. Params must come from prepare_dqn_params().

    Returns [batch, action_dim] f32 Q-values.
    """
    batch, state_dim = x.shape
    k_pad, hidden_dim = w1_p.shape
    action_dim = w2_p.shape[1]
    assert state_dim <= k_pad

    tm, b_pad = _choose_tile(batch, block_m)

    # Per-call x prep only (x changes every call): pad + cast in one fused op.
    x_p = jnp.zeros((b_pad, k_pad), jnp.bfloat16).at[:batch, :state_dim].set(
        x.astype(jnp.bfloat16))

    grid = (b_pad // tm,)

    # Batch-tiled x/out; weights & biases map to block (0, 0) every step so
    # they stay VMEM-resident and are DMA'd only once.
    in_specs = [
        pl.BlockSpec((tm, k_pad), lambda i: (i, 0)),
        pl.BlockSpec((k_pad, hidden_dim), lambda i: (0, 0)),
        pl.BlockSpec((1, hidden_dim), lambda i: (0, 0)),
        pl.BlockSpec((hidden_dim, action_dim), lambda i: (0, 0)),
        pl.BlockSpec((1, action_dim), lambda i: (0, 0)),
    ]
    out_specs = pl.BlockSpec((tm, action_dim), lambda i: (i, 0))

    flops = 2 * b_pad * (k_pad * hidden_dim + hidden_dim * action_dim)
    bytes_accessed = (x_p.size * 2 + w1_p.size * 2 + b1_p.size * 4
                      + w2_p.size * 2 + b2_p.size * 4
                      + b_pad * action_dim * 4)
    cost = pl.CostEstimate(flops=flops, transcendentals=0,
                           bytes_accessed=bytes_accessed)

    # VMEM guard (v7x has only 64 MiB physical / 32 MiB scoped default):
    # double-buffered x/out tiles + resident weights + [tm, hidden] hiddens.
    approx_vmem = (2 * (tm * k_pad * 2 + tm * action_dim * 4)
                   + k_pad * hidden_dim * 2 + hidden_dim * LANE * 2
                   + hidden_dim * 4 * 2
                   + tm * hidden_dim * (4 + 2))
    vmem_limit = min(64 * 1024 * 1024, max(2 * approx_vmem, 8 * 1024 * 1024))

    out = pl.pallas_call(
        dqn_kernel,
        out_shape=jax.ShapeDtypeStruct((b_pad, action_dim), jnp.float32),
        grid_spec=pltpu.PrefetchScalarGridSpec(
            num_scalar_prefetch=0,
            grid=grid,
            in_specs=in_specs,
            out_specs=out_specs,
        ),
        compiler_params=pltpu.CompilerParams(
            # Batch tiles are independent -> shard across TensorCores on v7x.
            dimension_semantics=("parallel",),
            vmem_limit_bytes=vmem_limit,
        ),
        cost_estimate=cost,
    )(x_p, w1_p, b1_p, w2_p, b2_p)

    # Only padded *rows* can exist (no padded action columns); slice only when
    # the batch isn't a tile multiple.
    if b_pad != batch:
        out = out[:batch]
    return out


def init_dqn_params(key, state_dim, action_dim, hidden_dim=256):
    """Deterministic init mimicking PyTorch nn.Linear default U(-1/sqrt(fan_in), ...)."""
    k1, k2, k3, k4 = jax.random.split(key, 4)
    bound1 = 1.0 / jnp.sqrt(jnp.float32(state_dim))
    bound2 = 1.0 / jnp.sqrt(jnp.float32(hidden_dim))
    w1 = jax.random.uniform(k1, (state_dim, hidden_dim), jnp.float32, -bound1, bound1)
    b1 = jax.random.uniform(k2, (hidden_dim,), jnp.float32, -bound1, bound1)
    w2 = jax.random.uniform(k3, (hidden_dim, action_dim), jnp.float32, -bound2, bound2)
    b2 = jax.random.uniform(k4, (action_dim,), jnp.float32, -bound2, bound2)
    return w1, b1, w2, b2


def reference_forward(x, w1, b1, w2, b2):
    """Same math with the same bf16 quantization of matmul operands, f32 accumulate."""
    f32 = jnp.float32
    hi = jax.lax.Precision.HIGHEST
    xb = x.astype(jnp.bfloat16).astype(f32)
    w1b = w1.astype(jnp.bfloat16).astype(f32)
    w2b = w2.astype(jnp.bfloat16).astype(f32)
    h = jnp.maximum(jnp.dot(xb, w1b, precision=hi) + b1.reshape(1, -1), 0.0)
    hb = h.astype(jnp.bfloat16).astype(f32)
    return jnp.dot(hb, w2b, precision=hi) + b2.reshape(1, -1)


if __name__ == "__main__":
    # Flappy-bird-like sizes: 12-dim state, 2 actions, hidden_dim=256.
    batch, state_dim, action_dim, hidden_dim = 8, 12, 2, 256

    key = jax.random.PRNGKey(0)
    kx, kp = jax.random.split(key)
    x = jax.random.normal(kx, (batch, state_dim), jnp.float32)
    w1, b1, w2, b2 = init_dqn_params(kp, state_dim, action_dim, hidden_dim)

    # One-time param prep (hoisted out of the per-call forward path).
    w1_p, b1_p, w2_p, b2_p = prepare_dqn_params(w1, b1, w2, b2)

    # Small inference-style batch (single tile).
    out = jax.block_until_ready(dqn_forward(x, w1_p, b1_p, w2_p, b2_p))
    ref = reference_forward(x, w1, b1, w2, b2)
    assert out.shape == (batch, action_dim), out.shape
    assert jnp.allclose(out, ref, atol=1e-2, rtol=1e-2), "mismatch vs reference (batch=8)"

    # Non-multiple-of-8 batch: exercises row padding and the >=2-step grid
    # (two batch tiles -> pipelined DMA, both TCs on v7x).
    batch2 = 40
    x2 = jax.random.normal(jax.random.PRNGKey(1), (batch2, state_dim), jnp.float32)
    out2 = jax.block_until_ready(dqn_forward(x2, w1_p, b1_p, w2_p, b2_p))
    ref2 = reference_forward(x2, w1, b1, w2, b2)
    assert out2.shape == (batch2, action_dim), out2.shape
    assert jnp.allclose(out2, ref2, atol=1e-2, rtol=1e-2), "mismatch vs reference (batch=40)"

    print("KERNEL_OK")
</pallas_src>

<mosaic_0001>
module attributes {stable_mosaic.version = 11 : i64} {
  func.func @dqn_kernel(%arg0: i32, %arg1: memref<8x16xbf16, #tpu.memory_space<vmem>>, %arg2: memref<16x256xbf16, #tpu.memory_space<vmem>>, %arg3: memref<1x256xf32, #tpu.memory_space<vmem>>, %arg4: memref<256x2xbf16, #tpu.memory_space<vmem>>, %arg5: memref<1x2xf32, #tpu.memory_space<vmem>>, %arg6: memref<8x2xf32, #tpu.memory_space<vmem>>) attributes {dimension_semantics = [#tpu.dimension_semantics<parallel>], iteration_bounds = array<i64: 1>, scalar_prefetch = 0 : i64, scratch_operands = 0 : i64, tpu.core_type = #tpu.core_type<tc>, window_params = [{transform_indices = @transform_0, window_bounds = array<i64: 8, 16>}, {pipeline_mode = #tpu.pipeline_mode<synchronous>, transform_indices = @transform_1, window_bounds = array<i64: 16, 256>}, {pipeline_mode = #tpu.pipeline_mode<synchronous>, transform_indices = @transform_2, window_bounds = array<i64: 1, 256>}, {pipeline_mode = #tpu.pipeline_mode<synchronous>, transform_indices = @transform_3, window_bounds = array<i64: 256, 2>}, {pipeline_mode = #tpu.pipeline_mode<synchronous>, transform_indices = @transform_4, window_bounds = array<i64: 1, 2>}, {transform_indices = @transform_5, window_bounds = array<i64: 8, 2>}]} {
    %c0 = arith.constant 0 : index
    %c0_0 = arith.constant 0 : index
    %0 = vector.load %arg1[%c0, %c0_0] : memref<8x16xbf16, #tpu.memory_space<vmem>>, vector<8x16xbf16>
    %c0_1 = arith.constant 0 : index
    %c0_2 = arith.constant 0 : index
    %1 = vector.load %arg2[%c0_1, %c0_2] : memref<16x256xbf16, #tpu.memory_space<vmem>>, vector<16x256xbf16>
    %cst = arith.constant dense<0.000000e+00> : vector<8x256xf32>
    %2 = tpu.matmul %0, %1, %cst {dimension_numbers = #tpu.dot_dimension_numbers<[1], [0], [0], [1], [0, 0, 1, 1], [], []>} : vector<8x16xbf16>, vector<16x256xbf16>, vector<8x256xf32> -> vector<8x256xf32>
    %c0_3 = arith.constant 0 : index
    %c0_4 = arith.constant 0 : index
    %3 = vector.load %arg3[%c0_3, %c0_4] : memref<1x256xf32, #tpu.memory_space<vmem>>, vector<1x256xf32>
    %4 = vector.broadcast %3 : vector<1x256xf32> to vector<8x256xf32>
    %5 = arith.addf %2, %4 : vector<8x256xf32>
    %cst_5 = arith.constant 0.000000e+00 : f32
    %6 = vector.broadcast %cst_5 : f32 to vector<8x256xf32>
    %7 = arith.maximumf %5, %6 : vector<8x256xf32>
    %8 = arith.truncf %7 : vector<8x256xf32> to vector<8x256xbf16>
    %c0_6 = arith.constant 0 : index
    %c0_7 = arith.constant 0 : index
    %9 = vector.load %arg4[%c0_6, %c0_7] : memref<256x2xbf16, #tpu.memory_space<vmem>>, vector<256x2xbf16>
    %cst_8 = arith.constant dense<0.000000e+00> : vector<8x2xf32>
    %10 = tpu.matmul %8, %9, %cst_8 {dimension_numbers = #tpu.dot_dimension_numbers<[1], [0], [0], [1], [0, 0, 1, 1], [], []>} : vector<8x256xbf16>, vector<256x2xbf16>, vector<8x2xf32> -> vector<8x2xf32>
    %c0_9 = arith.constant 0 : index
    %c0_10 = arith.constant 0 : index
    %11 = vector.load %arg5[%c0_9, %c0_10] : memref<1x2xf32, #tpu.memory_space<vmem>>, vector<1x2xf32>
    %12 = vector.broadcast %11 : vector<1x2xf32> to vector<8x2xf32>
    %13 = arith.addf %10, %12 : vector<8x2xf32>
    %c0_11 = arith.constant 0 : index
    %c0_12 = arith.constant 0 : index
    %14 = vector.load %arg6[%c0_11, %c0_12] : memref<8x2xf32, #tpu.memory_space<vmem>>, vector<8x2xf32>
    tpu.vector_store %arg6[%c0_11, %c0_12], %13 {strides = array<i32>} : memref<8x2xf32, #tpu.memory_space<vmem>>, vector<8x2xf32>,
    return
  }
  func.func @transform_0(%arg0: i32) -> (i32, i32) {
    %c0_i32 = arith.constant 0 : i32
    %c0_i32_0 = arith.constant 0 : i32
    return %arg0, %c0_i32 : i32, i32
  }
  func.func @transform_1(%arg0: i32) -> (i32, i32) {
    %c0_i32 = arith.constant 0 : i32
    %c0_i32_0 = arith.constant 0 : i32
    %c0_i32_1 = arith.constant 0 : i32
    return %c0_i32, %c0_i32_0 : i32, i32
  }
  func.func @transform_2(%arg0: i32) -> (i32, i32) {
    %c0_i32 = arith.constant 0 : i32
    %c0_i32_0 = arith.constant 0 : i32
    %c0_i32_1 = arith.constant 0 : i32
    return %c0_i32, %c0_i32_0 : i32, i32
  }
  func.func @transform_3(%arg0: i32) -> (i32, i32) {
    %c0_i32 = arith.constant 0 : i32
    %c0_i32_0 = arith.constant 0 : i32
    %c0_i32_1 = arith.constant 0 : i32
    return %c0_i32, %c0_i32_0 : i32, i32
  }
  func.func @transform_4(%arg0: i32) -> (i32, i32) {
    %c0_i32 = arith.constant 0 : i32
    %c0_i32_0 = arith.constant 0 : i32
    %c0_i32_1 = arith.constant 0 : i32
    return %c0_i32, %c0_i32_0 : i32, i32
  }
  func.func @transform_5(%arg0: i32) -> (i32, i32) {
    %c0_i32 = arith.constant 0 : i32
    %c0_i32_0 = arith.constant 0 : i32
    return %arg0, %c0_i32 : i32, i32
  }
}

</mosaic_0001>

<bundles_post_ra>
// kernel: dqn_forward.1
= control target key start
LH: loop header
LB: loop body
LE: loop exit
PB: predicated region body
PF: predicated region fallthrough
CT: control target
= control target key end

     0   :  { %v338_v1 = vmov 0   ;;  %vm46_vm0 = vcmask 130048   ;;  %v26_v20 = vlaneseq  ;;  %vm270_vm1 = vcmask 15360   ;;  %s435_s1 = inlined_call_operand.vmem [shape: bf16[16,256], index: 1, kind: input, shape index: {}]   ;;  %s436_s0 = inlined_call_operand.vmem [shape: bf16[8,16], index: 0, kind: input, shape index: {}]   ;;  %s437_s3 = inlined_call_operand.vmem [shape: bf16[256,2], index: 3, kind: input, shape index: {}]   ;;  %s438_s2 = inlined_call_operand.vmem [shape: f32[1,256], index: 2, kind: input, shape index: {}]   ;;  %s439_s4 = inlined_call_operand.vmem [shape: f32[1,2], index: 4, kind: input, shape index: {}]   ;;  %s440_s5 = inlined_call_operand.vmem [shape: f32[8,2], index: 5, kind: output, shape index: {}]  }
   0x1   :  { %v319_v0 = vld [vmem:[%s435_s1 + $0x4] ss:$8 sps:$4 sm:$0xff]   ;;  %82 = vmatprep.mubr.bf16.mxu0 %v338_v1  ;;  %v321_v2 = vld [vmem:[%s435_s1] ss:$8 sps:$4 sm:$0xff]   ;;  %v326_v8 = vld [vmem:[%s437_s3 + $0x50] sm:$0xff]  }
   0x2   :  { %v21_v3 = vld [vmem:[%s436_s0] sm:$0xf]  ;;  %50 = vmatprep.subr.bf16.mxu0 %v319_v0  ;;  %v324_v6 = vld [vmem:[%s437_s3 + $0x48] sm:$0xff]   ;;  %v327_v9 = vld [vmem:[%s437_s3 + $0x10] sm:$0xff]   ;;  %v27_v21 = vshrl.u32 %v26_v20, 7 }
   0x3   :  { %v322_v4 = vld [vmem:[%s437_s3 + $0x40] sm:$0xff]   ;;  %51 = vmatpush1.bf16.msra.mxu0 %v321_v2  ;;  %v325_v7 = vld [vmem:[%s437_s3 + $0x8] sm:$0xff]   ;;  %v328_v10 = vld [vmem:[%s437_s3 + $0x58] sm:$0xff]  }
   0x4   :  { %v323_v5 = vld [vmem:[%s437_s3] sm:$0xff]   ;;  %296 = vmatprep.subr.bf16.mxu1 %v322_v4  ;;  %v329_v11 = vld [vmem:[%s437_s3 + $0x18] sm:$0xff]   ;;  %v332_v14 = vld [vmem:[%s437_s3 + $0x68] sm:$0xff]   ;;  %v28_v22 = vsub.s32 0, %v27_v21  ;;  %v32_v24 = vsub.s32 1, %v27_v21 }
   0x5   :  { %297 = vmatpush3.bf16.msra.mxu1 %v323_v5  ;;  %v330_v12 = vld [vmem:[%s437_s3 + $0x60] sm:$0xff]   ;;  %v333_v15 = vld [vmem:[%s437_s3 + $0x28] sm:$0xff]   ;;  %v334_v16 = vld [vmem:[%s437_s3 + $0x70] sm:$0xff]  }
   0x6   :  { %278 = vmatmul.mubr.msk.bf16.vlgmr.msra.gmra.mrb[0].mxu0 %vm46_vm0, %v21_v3  ;;  %298 = vmatprep.subr.bf16.mxu1 %v324_v6  ;;  %v331_v13 = vld [vmem:[%s437_s3 + $0x20] sm:$0xff]   ;;  %v335_v17 = vld [vmem:[%s437_s3 + $0x30] sm:$0xff]   ;;  %v336_v18 = vld [vmem:[%s437_s3 + $0x78] sm:$0xff]  }
   0x7   :  { %v337_v19 = vld [vmem:[%s437_s3 + $0x38] sm:$0xff]   ;;  %v24_v23 = vld [vmem:[%s438_s2] sm:$0x3] }
   0x8   :  { %v29_v25 = vrot.slane %v24_v23, %v28_v22  ;;  %v33_v26 = vrot.slane %v24_v23, %v32_v24  ;;  %v279_v38 = vld [vmem:[%s439_s4] ss:$0 sm:$0xff] }
   0x9   :  { %299 = vmatpush3.bf16.msra.mxu1 %v325_v7 }
   0xa   :  { %300 = vmatprep.subr.bf16.mxu1 %v326_v8 }
   0xd   :  { %301 = vmatpush3.bf16.msra.mxu1 %v327_v9 }
   0xe   :  { %302 = vmatprep.subr.bf16.mxu1 %v328_v10 }
  0x11   :  { %303 = vmatpush3.bf16.msra.mxu1 %v329_v11 }
  0x12   :  { %304 = vmatprep.subr.bf16.mxu1 %v330_v12 }
  0x15   :  { %305 = vmatpush3.bf16.msra.mxu1 %v331_v13 }
  0x16   :  { %306 = vmatprep.subr.bf16.mxu1 %v332_v14 }
  0x19   :  { %307 = vmatpush3.bf16.msra.mxu1 %v333_v15 }
  0x1a   :  { %308 = vmatprep.subr.bf16.mxu1 %v334_v16 }
  0x1d   :  { %309 = vmatpush3.bf16.msra.mxu1 %v335_v17 }
  0x1e   :  { %310 = vmatprep.subr.bf16.mxu1 %v336_v18 }
  0x21   :  { %311 = vmatpush3.bf16.msra.mxu1 %v337_v19 }
  0xd9   :  { %v84_v27 = vpop.f32.mrb[0].mxu0 }
  0xda   :  { %v85_v28 = vadd.f32 %v84_v27, %v29_v25  ;;  %v86_v29 = vpop.f32.mrb[1].mxu0 }
  0xdb   :  { %v87_v30 = vadd.f32 %v86_v29, %v33_v26  ;;  %v88_v31 = vpop.f32.mrb[2].mxu0 }
  0xdc   :  { %v91_v32 = vmax.f32 %v85_v28, 0.0  ;;  %v89_v33 = vpop.f32.mrb[3].mxu0 }
  0xdd   :  { %v92_v34 = vmax.f32 %v87_v30, 0.0 }
  0xde   :  { %v93_v36 = vpack.c.bf16 %v91_v32, %v91_v32 }
  0xdf   :  { %v94_v35 = vpack.c.bf16 %v92_v34, %v92_v34 }
  0xe1   :  { %262 = vmatprep.mubr.bf16.mxu1 %v94_v35 }
  0xe2   :  { %263 = vmatmul.mubr.bf16.vlgmr.msra.gmra.mrb[0].mxu1 %v93_v36 }
 0x1b5   :  { %v312_v37 = vpop.f32.mrb[0].mxu1 }
 0x1b6   :  { %v313_v39 = vpop.f32.mrb[1].mxu1 }
 0x1b7   :  { %v314_v40 = vadd.f32 %v313_v39, %v312_v37  ;;  %v315_v41 = vpop.f32.mrb[2].mxu1 }
 0x1b8   :  { %v316_v42 = vpop.f32.mrb[3].mxu1 }
 0x1b9   :  { %v265_v43 = vadd.f32 %v314_v40, %v279_v38 }
 0x1bb   :  { %271 = vst.msk [vmem:[%s440_s5] sm:$0xff] %vm270_vm1, %v265_v43 }

</bundles_post_ra>
